<compile_context>
chip_gen: v6e
topology: v6e:2x2x1
jax: 0.10.0
libtpu: 0.0.40
codegen_flags: <defaults>
</compile_context>

<pallas_src>
import functools

import jax
import jax.numpy as jnp
from jax.experimental import pallas as pl
from jax.experimental.pallas import tpu as pltpu

_MIB = 1024 * 1024


def _round_up(x, m):
    return ((x + m - 1) // m) * m


def _tpu_vmem_and_cores():
    """Best-effort trace-time hardware query.

    Returns (physical VMEM bytes per core, assumed TensorCores per chip).
    Falls back to a conservative 64 MiB / 2-core assumption: correct for v7x, and the
    2-core split heuristic only adds a couple of ~0.35us grid steps on v5e/v6e.
    """
    vmem = 64 * _MIB
    try:
        info = pltpu.get_tpu_info()
        vmem = int(getattr(info, "vmem_capacity_bytes", vmem))
    except Exception:
        pass
    vmem = max(32 * _MIB, min(vmem, 128 * _MIB))
    # v7x is the only generation with 64 MiB/TC -- and the only one with 2 TCs/chip.
    cores = 2 if vmem <= 64 * _MIB else 1
    return vmem, cores


def _linear_kernel_direct(x_ref, w_ref, b_ref, o_ref, *, compute_dtype):
    """out = x @ W + b, accumulating directly into the resident f32 output block."""
    k = pl.program_id(2)
    x = x_ref[...]
    w = w_ref[...]
    if compute_dtype is not None:
        x = x.astype(compute_dtype)
        w = w.astype(compute_dtype)  # no-op when W was pre-cast in the wrapper
    partial = jnp.dot(x, w, preferred_element_type=jnp.float32)

    @pl.when(k == 0)
    def _():
        # Bias fused into the first matmul store: no zero-fill pass and no separate
        # (tm, tn) load-add-store for the bias.
        o_ref[...] = partial + b_ref[...].astype(jnp.float32)

    @pl.when(k != 0)
    def _():
        o_ref[...] += partial


def _linear_kernel_acc(x_ref, w_ref, b_ref, o_ref, acc_ref, *, compute_dtype):
    """Same, but with an f32 scratch accumulator (used for non-f32 output dtypes)."""
    k = pl.program_id(2)
    x = x_ref[...]
    w = w_ref[...]
    if compute_dtype is not None:
        x = x.astype(compute_dtype)
        w = w.astype(compute_dtype)
    partial = jnp.dot(x, w, preferred_element_type=jnp.float32)

    @pl.when(k == 0)
    def _():
        acc_ref[...] = partial + b_ref[...].astype(jnp.float32)

    @pl.when(k != 0)
    def _():
        acc_ref[...] += partial

    @pl.when(k == pl.num_programs(2) - 1)
    def _():
        o_ref[...] = acc_ref[...].astype(o_ref.dtype)


@functools.partial(jax.jit, static_argnames=("compute_dtype",))
def linear_forward(x, W, b, *, compute_dtype=None):
    """out = x @ W + b.

    compute_dtype=None keeps the module's f32 MXU path; compute_dtype=jnp.bfloat16
    feeds the MXU bf16 operands (f32 accumulation) for ~2-4x MXU throughput.
    """
    M, K = x.shape
    K2, N = W.shape
    if K != K2:
        raise ValueError(f"input_dim mismatch: x has {K}, W has {K2}")
    if b.shape != (N,):
        raise ValueError(f"bias must have shape ({N},), got {b.shape}")

    out_dtype = x.dtype

    # Weights are static: pre-cast once outside the kernel (halves W HBM traffic and
    # its VMEM tile footprint) instead of casting every K step on the VPU.
    if compute_dtype is not None:
        W = W.astype(compute_dtype)
    b = b.astype(jnp.float32)

    x_item = jnp.dtype(x.dtype).itemsize
    w_item = jnp.dtype(W.dtype).itemsize
    out_item = jnp.dtype(out_dtype).itemsize

    # ---- hardware-derived VMEM budget (keep ~25% headroom for Mosaic scratch) ----
    vmem_cap, n_cores = _tpu_vmem_and_cores()
    usable = (vmem_cap // 4) * 3  # 48 MiB on v7x, 96 MiB on v5e/v6e

    # ---- tile selection: aligned, full-size tiles; pad dims up to tile multiples ----
    sublane = 8 * max(1, 4 // x_item)         # 8 (f32), 16 (bf16), 32 (int8/fp8)
    tm = min(512, _round_up(M, sublane))
    tn = min(512, _round_up(N, 128))          # lane-dense output tiles (unmasked vst)

    use_scratch = out_dtype != jnp.float32
    fixed = (
        2 * tm * tn * out_item                # output tile, double-buffered
        + (tm * tn * 4 if use_scratch else 0) # f32 accumulator scratch
        + 2 * tn * 4                          # bias tile, double-buffered
    )
    per_k = 2 * (tm * x_item + tn * w_item)   # x & W tiles (double-buffered) per unit tk
    tk = max(128, ((usable - fixed) // per_k) // 128 * 128)
    tk = min(tk, 2048, _round_up(K, 128))

    # v7x: guarantee >= 2 parallel blocks so both TensorCores get work.
    if n_cores > 1 and (_round_up(M, tm) // tm) * (_round_up(N, tn) // tn) < 2:
        if tm % 16 == 0:      # split M first (keeps tm a multiple of the sublane)
            tm //= 2
        elif tn % 256 == 0:   # otherwise split N (keeps tn a multiple of 128)
            tn //= 2

    Mp, Kp, Np = _round_up(M, tm), _round_up(K, tk), _round_up(N, tn)

    # Zero-pad to tile multiples: keeps every block (8,128)-aligned and unmasked;
    # zero K rows contribute nothing, padded M rows / N cols are sliced off below.
    xp = x if (Mp == M and Kp == K) else jnp.pad(x, ((0, Mp - M), (0, Kp - K)))
    Wp = W if (Kp == K and Np == N) else jnp.pad(W, ((0, Kp - K), (0, Np - N)))
    bp = (b if Np == N else jnp.pad(b, (0, Np - N))).reshape(1, Np)

    grid = (Mp // tm, Np // tn, Kp // tk)

    scratch_shapes = [pltpu.VMEM((tm, tn), jnp.float32)] if use_scratch else []
    kernel = functools.partial(
        _linear_kernel_acc if use_scratch else _linear_kernel_direct,
        compute_dtype=compute_dtype,
    )

    # TODO(synk): for very long K grids with small tk, pipeline_mode=pl.Buffered(3)
    # on the x/W BlockSpecs could hide residual DMA latency; with budget-sized tiles
    # the default double-buffering already covers it.
    out_padded = pl.pallas_call(
        kernel,
        out_shape=jax.ShapeDtypeStruct((Mp, Np), out_dtype),
        grid_spec=pltpu.PrefetchScalarGridSpec(
            num_scalar_prefetch=0,
            grid=grid,
            in_specs=[
                pl.BlockSpec((tm, tk), lambda i, j, k: (i, k)),  # x tile
                pl.BlockSpec((tk, tn), lambda i, j, k: (k, j)),  # W tile
                pl.BlockSpec((1, tn), lambda i, j, k: (0, j)),   # bias tile
            ],
            out_specs=pl.BlockSpec((tm, tn), lambda i, j, k: (i, j)),
            scratch_shapes=scratch_shapes,
        ),
        compiler_params=pltpu.CompilerParams(
            dimension_semantics=("parallel", "parallel", "arbitrary"),
            vmem_limit_bytes=int(usable),
        ),
    )(xp, Wp, bp)

    if Mp == M and Np == N:
        return out_padded
    return out_padded[:M, :N]


if __name__ == "__main__":
    key = jax.random.PRNGKey(0)
    kx, kw, kb = jax.random.split(key, 3)

    # ---- shape 1: module-style init (W ~ randn * sqrt(2/input_dim), b = 0) ----
    batch, input_dim, output_dim = 16, 128, 256
    W = jax.random.normal(kw, (input_dim, output_dim), jnp.float32) * jnp.sqrt(
        2.0 / input_dim
    )
    b = jnp.zeros((output_dim,), jnp.float32)
    x = jax.random.normal(kx, (batch, input_dim), jnp.float32)

    # Reference at HIGHEST precision; tolerance covers the TPU MXU's default
    # f32-matmul precision (bf16 operand passes) on both the XLA and Pallas sides.
    ref = jnp.dot(x, W, precision=jax.lax.Precision.HIGHEST) + b
    out = jax.block_until_ready(linear_forward(x, W, b))
    assert out.shape == ref.shape
    assert jnp.allclose(out, ref, atol=1e-2, rtol=1e-2)

    # ---- shape 2: non-(8,128)-aligned dims -> exercises the padding path ----
    M2, K2, N2 = 10, 100, 75
    W2 = jax.random.normal(kw, (K2, N2), jnp.float32) * jnp.sqrt(2.0 / K2)
    b2 = jax.random.normal(kb, (N2,), jnp.float32)
    x2 = jax.random.normal(kx, (M2, K2), jnp.float32)
    ref2 = jnp.dot(x2, W2, precision=jax.lax.Precision.HIGHEST) + b2
    out2 = jax.block_until_ready(linear_forward(x2, W2, b2))
    assert out2.shape == ref2.shape
    assert jnp.allclose(out2, ref2, atol=1e-2, rtol=1e-2)

    # ---- shape 3: bf16 MXU operands (f32 accumulator), bf16-level tolerance ----
    out3 = jax.block_until_ready(linear_forward(x, W, b, compute_dtype=jnp.bfloat16))
    assert out3.shape == ref.shape
    assert jnp.allclose(out3, ref, atol=5e-2, rtol=5e-2)

    print("KERNEL_OK")
</pallas_src>

<mosaic_0001>
module attributes {stable_mosaic.version = 11 : i64} {
  func.func @_linear_kernel_direct(%arg0: i32, %arg1: i32, %arg2: i32, %arg3: memref<8x128xf32, #tpu.memory_space<vmem>>, %arg4: memref<128x256xf32, #tpu.memory_space<vmem>>, %arg5: memref<1x256xf32, #tpu.memory_space<vmem>>, %arg6: memref<8x256xf32, #tpu.memory_space<vmem>>) attributes {dimension_semantics = [#tpu.dimension_semantics<parallel>, #tpu.dimension_semantics<parallel>, #tpu.dimension_semantics<arbitrary>], iteration_bounds = array<i64: 2, 1, 1>, scalar_prefetch = 0 : i64, scratch_operands = 0 : i64, tpu.core_type = #tpu.core_type<tc>, window_params = [{transform_indices = @transform_0, window_bounds = array<i64: 8, 128>}, {transform_indices = @transform_1, window_bounds = array<i64: 128, 256>}, {transform_indices = @transform_2, window_bounds = array<i64: 1, 256>}, {transform_indices = @transform_3, window_bounds = array<i64: 8, 256>}]} {
    %c0 = arith.constant 0 : index
    %c0_0 = arith.constant 0 : index
    %0 = vector.load %arg3[%c0, %c0_0] : memref<8x128xf32, #tpu.memory_space<vmem>>, vector<8x128xf32>
    %c0_1 = arith.constant 0 : index
    %c0_2 = arith.constant 0 : index
    %1 = vector.load %arg4[%c0_1, %c0_2] : memref<128x256xf32, #tpu.memory_space<vmem>>, vector<128x256xf32>
    %cst = arith.constant dense<0.000000e+00> : vector<8x256xf32>
    %2 = tpu.matmul %0, %1, %cst {dimension_numbers = #tpu.dot_dimension_numbers<[1], [0], [0], [1], [0, 0, 1, 1], [], []>} : vector<8x128xf32>, vector<128x256xf32>, vector<8x256xf32> -> vector<8x256xf32>
    %c0_i32 = arith.constant 0 : i32
    %3 = arith.cmpi eq, %arg2, %c0_i32 : i32
    %4 = arith.extui %3 : i1 to i32
    %c0_i32_3 = arith.constant 0 : i32
    %5 = arith.cmpi ne, %4, %c0_i32_3 : i32
    scf.if %5 {
      %c0_6 = arith.constant 0 : index
      %c0_7 = arith.constant 0 : index
      %9 = vector.load %arg5[%c0_6, %c0_7] : memref<1x256xf32, #tpu.memory_space<vmem>>, vector<1x256xf32>
      %10 = vector.broadcast %9 : vector<1x256xf32> to vector<8x256xf32>
      %11 = arith.addf %2, %10 : vector<8x256xf32>
      %c0_8 = arith.constant 0 : index
      %c0_9 = arith.constant 0 : index
      %12 = vector.load %arg6[%c0_8, %c0_9] : memref<8x256xf32, #tpu.memory_space<vmem>>, vector<8x256xf32>
      tpu.vector_store %arg6[%c0_8, %c0_9], %11 {strides = array<i32>} : memref<8x256xf32, #tpu.memory_space<vmem>>, vector<8x256xf32>,
    } else {
    }
    %c0_i32_4 = arith.constant 0 : i32
    %6 = arith.cmpi ne, %arg2, %c0_i32_4 : i32
    %7 = arith.extui %6 : i1 to i32
    %c0_i32_5 = arith.constant 0 : i32
    %8 = arith.cmpi ne, %7, %c0_i32_5 : i32
    scf.if %8 {
      %c0_6 = arith.constant 0 : index
      %c0_7 = arith.constant 0 : index
      %9 = vector.load %arg6[%c0_6, %c0_7] : memref<8x256xf32, #tpu.memory_space<vmem>>, vector<8x256xf32>
      %10 = arith.addf %9, %2 : vector<8x256xf32>
      %c0_8 = arith.constant 0 : index
      %c0_9 = arith.constant 0 : index
      %11 = vector.load %arg6[%c0_8, %c0_9] : memref<8x256xf32, #tpu.memory_space<vmem>>, vector<8x256xf32>
      tpu.vector_store %arg6[%c0_8, %c0_9], %10 {strides = array<i32>} : memref<8x256xf32, #tpu.memory_space<vmem>>, vector<8x256xf32>,
    } else {
    }
    return
  }
  func.func @transform_0(%arg0: i32, %arg1: i32, %arg2: i32) -> (i32, i32) {
    %c0_i32 = arith.constant 0 : i32
    return %arg0, %arg2 : i32, i32
  }
  func.func @transform_1(%arg0: i32, %arg1: i32, %arg2: i32) -> (i32, i32) {
    %c0_i32 = arith.constant 0 : i32
    return %arg2, %arg1 : i32, i32
  }
  func.func @transform_2(%arg0: i32, %arg1: i32, %arg2: i32) -> (i32, i32) {
    %c0_i32 = arith.constant 0 : i32
    %c0_i32_0 = arith.constant 0 : i32
    return %c0_i32, %arg1 : i32, i32
  }
  func.func @transform_3(%arg0: i32, %arg1: i32, %arg2: i32) -> (i32, i32) {
    %c0_i32 = arith.constant 0 : i32
    return %arg0, %arg1 : i32, i32
  }
}

</mosaic_0001>

<bundles_post_ra>
// kernel: linear_forward.1
= control target key start
LH: loop header
LB: loop body
LE: loop exit
PB: predicated region body
PF: predicated region fallthrough
CT: control target
= control target key end

     0   :  { %8 = vsyncpa [#allocation3], 0  ;;  %s957_s0 = inlined_call_operand.hbm [shape: f32[16,128], index: 0, kind: input, shape index: {}]   ;;  %s958_s1 = inlined_call_operand.hbm [shape: f32[128,256], index: 1, kind: input, shape index: {}]   ;;  %s959_s2 = inlined_call_operand.vmem [shape: f32[1,256], index: 2, kind: input, shape index: {}]   ;;  %s960_s3 = inlined_call_operand.hbm [shape: f32[16,256], index: 3, kind: output, shape index: {}]  }
   0x1   :  { %10 = vsyncpa [#allocation3 + $0x1], 0 }
   0x2   :  { %11 = vsyncpa [#allocation6], 0 }
   0x3   :  { %12 = vsyncpa [#allocation4], 0 }
   0x4   :  { %14 = vsyncpa [#allocation4 + $0x1], 0  ;;  %s783_s12 = smov 0   ;;  %s785_s13 = smov 0  }
   0x5   :  { %s787_s14 = smov 0   ;;  %s789_s15 = smov 0  }
   0x6   :  { %s791_s16 = smov 0   ;;  %s793_s17 = smov 0  }
   0x7 LB: > { %s523_s18 = sadd.s32 4294967295, %s755_s17   ;;  %s524_s19 = sadd.s32 4294967294, %s755_s17   ;;  %s755_s17 = sphi %s793_s17, %s20_s17   ;;  %s751_s16 = sphi %s791_s16, %s978_s16   ;;  %s747_s15 = sphi %s789_s15, %s977_s15   ;;  %s743_s14 = sphi %s787_s14, %s976_s14   ;;  %s739_s13 = sphi %s785_s13, %s975_s13   ;;  %s735_s12 = sphi %s783_s12, %s974_s12  }
   0x8   : > { %p61_p0 = scmp.ne.s32.totalorder %s739_s13, %s735_s12  ;;  %p817_p1 = scmp.eq.s32.totalorder %s523_s18, 0 }
   0x9   : > { %p821_p2 = scmp.eq.s32.totalorder %s523_s18, 1  ;;  %p147_p3 = scmp.eq.s32.totalorder %s524_s19, 1 }
   0xa   : > { %p827_p4 = por %p817_p1, %p61_p0  ;;  %p525_p5 = scmp.ge.s32.totalorder %s755_s17, 1 }
   0xb   : > { %p832_p6 = por %p147_p3, %p61_p0  ;;  %p154_p7 = scmp.lt.s32.totalorder %s755_s17, 3 }
   0xc   : > { %s964_s22 = scalar_select %p827_p4, 1, 0 }
   0xd   : > { %s965_s23 = scalar_select %p832_p6, 1, 0 }
   0xe   : > { %p837_p8 = pnand %p525_p5, %p154_p7  ;;  %s757_s25 = smov [#allocation5]  }
   0xf   : > { %s172_s26 = sshll.u32 %s757_s25, 4  ;;  %s39_s28 = sadd.s32 1, %s751_s16  ;;  %s173_s26 = int_to_ptr.vmem [resolvable:$true] %s172_s26 }
  0x10   : > { %p549_p9 = pneg %p837_p8  ;;  %s628_s29 = scalar_lea.vmem %s173_s26, 4096 }
  0x11   : > { %p629_p13 = scmp.ne.s32.totalorder %s173_s26, %s628_s29  ;;  %p636_p5 = scmp.lt.s32.totalorder %s173_s26, %s173_s26 }
  0x12   : > { %p846_p11 = pnand %p549_p9, %p817_p1  ;;  %p637_p7 = scmp.lt.s32.totalorder %s628_s29, %s628_s29 }
  0x14   : > { %p619_p12 = pneg %p846_p11  ;;  %p638_p6 = por %p637_p7, %p636_p5 }
  0x16   : > { %p631_p0 = pnand %p629_p13, %p619_p12 }
  0x18   : > { %p632_p3 = pneg %p631_p0 }
  0x1a   : > { %p639_p4 = pnand %p638_p6, %p632_p3 }
  0x1c   : > { %642 = shalt.err (!%p639_p4)
}
  0x1d   : > { %s758_s30 = smov 256   ;;  %s759_s4 = smov 16  }
  0x1e   : > { %552 = dma.hbm_to_vmem [thread:$0]  (!%p846_p11), %s958_s1, 4096, %s173_s26, [#allocation6], %s758_s30, %s758_s30, %s759_s4  }
  0x1f   : > { %p41_p6 = scmp.ge.s32.totalorder %s39_s28, 2  ;;  %s48_s7 = sadd.s32 1, %s743_s14 }
  0x20   : > { %p55_p4 = scmp.ne.s32.totalorder %s743_s14, %s739_s13  ;;  %p56_p9 = scmp.eq.s32.totalorder %s755_s17, 0 }
  0x21   : > { %s980_s28 = smov (%p41_p6, %s39_s28), 0  ;;  %p562_p0 = scmp.lt.s32.totalorder %s755_s17, 2 }
  0x22   : > { %p864_p12 = por %p56_p9, %p55_p4  ;;  %p870_p13 = por %p821_p2, %p55_p4 }
  0x23   : > { %s43_s10 = ssub.s32 %s751_s16, %s980_s28  ;;  %s194_s11 = sand.u32 1, %s743_s14  }
  0x24   : > { %p46_p11 = scmp.eq.s32.totalorder %s43_s10, 0  ;;  %s529_s18 = sshll.u32 %s194_s11, 3 }
  0x25   : > { %s530_s25 = sshll.u32 %s751_s16, 7  ;;  %s198_s30 = scalar_lea.vmem [#allocation2], %s529_s18 }
  0x26   : > { %s879_s19 = scalar_select %p46_p11, %s743_s14, %s48_s7  }
  0x27   : > { %s204_s29 = scalar_lea.hbm %s957_s0, %s530_s25  ;;  %s206_s4 = sshll.u32 %s198_s30, 4  ;;  %s207_s4 = int_to_ptr.vmem [resolvable:$true] %s206_s4 }
  0x28   : > { %p887_p2 = pnand %p562_p0, %p864_p12  ;;  %s195_s5 = scalar_lea.sflag [#allocation3], %s194_s11 }
  0x29   : > { %s656_s6 = scalar_lea.vmem %s207_s4, 128  ;;  %s760_s7 = smov [#allocation2]  }
  0x2a   : > { %p645_p3 = pneg %p887_p2  ;;  %p657_p5 = scmp.ne.s32.totalorder %s207_s4, %s656_s6 }
  0x2b   : > { %s661_s10 = sshll.u32 %s760_s7, 4  ;;  %s662_s10 = int_to_ptr.vmem [resolvable:$false] %s661_s10 }
  0x2c   : > { %p659_p7 = pnand %p657_p5, %p645_p3  ;;  %s663_s25 = scalar_lea.vmem %s662_s10, 256 }
  0x2d   : > { %p664_p4 = scmp.lt.s32.totalorder %s207_s4, %s662_s10  ;;  %p665_p9 = scmp.lt.s32.totalorder %s663_s25, %s656_s6 }
  0x2e   : > { %p660_p6 = pneg %p659_p7 }
  0x2f   : > { %p666_p11 = por %p665_p9, %p664_p4 }
  0x31   : > { %p667_p10 = pnand %p666_p11, %p660_p6 }
  0x33   : > { %670 = shalt.err (!%p667_p10)
}
  0x34   : > { %556 = dma.hbm_to_vmem [thread:$0]  (!%p887_p2), %s204_s29, 128, %s207_s4, %s195_s5  }
  0x35   : > { %215 = sbr.rel (%p837_p8) target bundleno = 304 (0x130), region = 32  ;;  %s898_s8 = sand.u32 (!%p837_p8), 1, %s739_s13  }
  0x36   : > { %s532_s11 = sshll.u32 (!%p837_p8), %s898_s8, 3  ;;  %s218_s18 = scalar_lea.sflag (!%p837_p8), [#allocation3], %s898_s8 }
  0x37   : > { %s902_s26 = scalar_lea.vmem (!%p837_p8), [#allocation2], %s532_s11  ;;  %p971_p12 = scmp.ne.s32.totalorder (!%p837_p8), %s964_s22, 0 }
  0x3a   : > { %722 = dma.done.wait (%p971_p12), %s218_s18, 128  }
  0x3b   : > { %724 = vsyncadd (%p971_p12), %s218_s18, 4294967168 }
  0x3c   : > { %726 = dma.done.wait (%p817_p1), [#allocation6], 4096  }
  0x3d   : > { %728 = vsyncadd (%p817_p1), [#allocation6], 4294963200  ;;  %v761_v0 = vmov 0.0   ;;  %v292_v1 = vld [vmem:[#allocation5 + $0xf8] sm:$0xff]  ;;  %v291_v2 = vld [vmem:[#allocation5 + $0xf0] sm:$0xff]  ;;  %v370_v34 = vlaneseq  ;;  %s534_s20 = sshll.u32 %s898_s8, 4 }
  0x3e   : > { %357 = vmatprep.mubr.f32.mxu0 %v761_v0  ;;  %v290_v3 = vld [vmem:[#allocation5 + $0xe8] sm:$0xff]  ;;  %293 = vmatprep.subr.mxu0 %v292_v1  ;;  %v289_v4 = vld [vmem:[#allocation5 + $0xe0] sm:$0xff]  ;;  %v288_v5 = vld [vmem:[#allocation5 + $0xd8] sm:$0xff]  ;;  %s540_s27 = sshll.u32 %s747_s15, 8  ;;  %s251_s29 = scalar_lea.vmem [#allocation7], %s534_s20 }
  0x3f   : > { %294 = vmatpush1.msra.mxu0 %v291_v2  ;;  %v287_v6 = vld [vmem:[#allocation5 + $0xd0] sm:$0xff]  ;;  %v286_v7 = vld [vmem:[#allocation5 + $0xc8] sm:$0xff]  ;;  %v285_v8 = vld [vmem:[#allocation5 + $0xc0] sm:$0xff]  ;;  %v371_v35 = vshrl.u32 %v370_v34, 7  ;;  %s411_s30 = sshll.u32 %s251_s29, 4  ;;  %s409_s5 = scalar_lea.hbm %s960_s3, %s540_s27  ;;  %s412_s30 = int_to_ptr.vmem [resolvable:$true] %s411_s30 }
  0x40   : > { %295 = vmatprep.subr.mxu0 %v290_v3  ;;  %v284_v9 = vld [vmem:[#allocation5 + $0xb8] sm:$0xff]  ;;  %v283_v10 = vld [vmem:[#allocation5 + $0xb0] sm:$0xff]  ;;  %v282_v11 = vld [vmem:[#allocation5 + $0xa8] sm:$0xff]  ;;  %s395_s6 = scalar_lea.sflag [#allocation4], %s898_s8  ;;  %s671_s7 = scalar_lea.vmem %s412_s30, 256 }
  0x41   : > { %296 = vmatpush1.msra.mxu0 %v289_v4  ;;  %v281_v12 = vld [vmem:[#allocation5 + $0xa0] sm:$0xff]  ;;  %v280_v13 = vld [vmem:[#allocation5 + $0x98] sm:$0xff]  ;;  %v279_v14 = vld [vmem:[#allocation5 + $0x90] sm:$0xff]  ;;  %v372_v36 = vsub.s32 0, %v371_v35  ;;  %v376_v38 = vsub.s32 1, %v371_v35  ;;  %p672_p1 = scmp.ne.s32.totalorder %s412_s30, %s671_s7  ;;  %s762_s10 = smov [#allocation7]  }
  0x42   : > { %297 = vmatprep.subr.mxu0 %v288_v5  ;;  %v278_v15 = vld [vmem:[#allocation5 + $0x88] sm:$0xff]  ;;  %v277_v16 = vld [vmem:[#allocation5 + $0x80] sm:$0xff]  ;;  %v276_v17 = vld [vmem:[#allocation5 + $0x78] sm:$0xff]  ;;  %s675_s15 = sshll.u32 %s762_s10, 4  ;;  %s676_s15 = int_to_ptr.vmem [resolvable:$false] %s675_s15 }
  0x43   : > { %298 = vmatpush1.msra.mxu0 %v287_v6  ;;  %v275_v18 = vld [vmem:[#allocation5 + $0x70] sm:$0xff]  ;;  %v274_v19 = vld [vmem:[#allocation5 + $0x68] sm:$0xff]  ;;  %v273_v20 = vld [vmem:[#allocation5 + $0x60] sm:$0xff]  ;;  %p673_p8 = pnand %p672_p1, %p870_p13  ;;  %s677_s25 = scalar_lea.vmem %s676_s15, 512 }
  0x44   : > { %299 = vmatprep.subr.mxu0 %v286_v7  ;;  %v272_v21 = vld [vmem:[#allocation5 + $0x58] sm:$0xff]  ;;  %v271_v22 = vld [vmem:[#allocation5 + $0x50] sm:$0xff]  ;;  %v270_v23 = vld [vmem:[#allocation5 + $0x48] sm:$0xff]  ;;  %p678_p0 = scmp.lt.s32.totalorder %s412_s30, %s676_s15  ;;  %p679_p2 = scmp.lt.s32.totalorder %s677_s25, %s671_s7 }
  0x45   : > { %300 = vmatpush1.msra.mxu0 %v285_v8  ;;  %v269_v24 = vld [vmem:[#allocation5 + $0x40] sm:$0xff]  ;;  %v268_v25 = vld [vmem:[#allocation5 + $0x38] sm:$0xff]  ;;  %v267_v26 = vld [vmem:[#allocation5 + $0x30] sm:$0xff]  ;;  %p674_p10 = pneg %p673_p8 }
  0x46   : > { %301 = vmatprep.subr.mxu0 %v284_v9  ;;  %v266_v27 = vld [vmem:[#allocation5 + $0x28] sm:$0xff]  ;;  %v265_v28 = vld [vmem:[#allocation5 + $0x20] sm:$0xff]  ;;  %v264_v29 = vld [vmem:[#allocation5 + $0x18] sm:$0xff]  ;;  %p680_p3 = por %p679_p2, %p678_p0 }
  0x47   : > { %302 = vmatpush1.msra.mxu0 %v283_v10  ;;  %v263_v30 = vld [vmem:[#allocation5 + $0x10] sm:$0xff]  ;;  %v262_v31 = vld [vmem:[#allocation5 + $0x8] sm:$0xff]  ;;  %v261_v32 = vld [vmem:[#allocation5] sm:$0xff] }
  0x48   : > { %303 = vmatprep.subr.mxu0 %v282_v11  ;;  %v260_v33 = vld [vmem:[%s902_s26] sm:$0xff]  ;;  %p681_p5 = pnand %p680_p3, %p674_p10 }
  0x49   : > { %304 = vmatpush1.msra.mxu0 %v281_v12  ;;  %v368_v37 = vld [vmem:[%s959_s2] sm:$0x3] }
  0x4a   : > { %305 = vmatprep.subr.mxu0 %v280_v13  ;;  %v373_v39 = vrot.slane %v368_v37, %v372_v36  ;;  %v377_v40 = vrot.slane %v368_v37, %v376_v38 }
  0x4b   : > { %306 = vmatpush1.msra.mxu0 %v279_v14 }
  0x4c   : > { %307 = vmatprep.subr.mxu0 %v278_v15 }
  0x4d   : > { %308 = vmatpush1.msra.mxu0 %v277_v16 }
  0x4e   : > { %309 = vmatprep.subr.mxu0 %v276_v17 }
  0x4f   : > { %310 = vmatpush1.msra.mxu0 %v275_v18 }
  0x50   : > { %311 = vmatprep.subr.mxu0 %v274_v19 }
  0x51   : > { %312 = vmatpush1.msra.mxu0 %v273_v20 }
  0x52   : > { %313 = vmatprep.subr.mxu0 %v272_v21 }
  0x53   : > { %314 = vmatpush1.msra.mxu0 %v271_v22 }
  0x54   : > { %315 = vmatprep.subr.mxu0 %v270_v23 }
  0x55   : > { %316 = vmatpush1.msra.mxu0 %v269_v24 }
  0x56   : > { %317 = vmatprep.subr.mxu0 %v268_v25 }
  0x57   : > { %318 = vmatpush1.msra.mxu0 %v267_v26 }
  0x58   : > { %319 = vmatprep.subr.mxu0 %v266_v27 }
  0x59   : > { %320 = vmatpush1.msra.mxu0 %v265_v28 }
  0x5a   : > { %321 = vmatprep.subr.mxu0 %v264_v29 }
  0x5b   : > { %322 = vmatpush1.msra.mxu0 %v263_v30 }
  0x5c   : > { %323 = vmatprep.subr.mxu0 %v262_v31 }
  0x5d   : > { %324 = vmatpush1.msra.mxu0 %v261_v32 }
  0x5e   : > { %358 = vmatmul.mubr.f32.vlgmr.msra.gmra.mxu0 %v260_v33 }
 0x11e   : > { %v359_v41 = vpop.f32.mrf.mxu0 }
 0x11f   : > { %v380_v42 = vadd.f32 %v373_v39, %v359_v41 }
 0x120   : > { %v361_v43 = vpop.f32.mrf.mxu0 }
 0x121   : > { %382 = vst [vmem:[%s251_s29] sm:$0xff] %v380_v42  ;;  %v381_v44 = vadd.f32 %v377_v40, %v361_v43 }
 0x123   : > { %383 = vst [vmem:[%s251_s29 + $0x8] sm:$0xff] %v381_v44 }
 0x124   : > { %684 = shalt.err (!%p681_p5)
}
 0x125   : > { %s685_s11 = scalar_lea.hbm %s409_s5, 256  ;;  %s689_s26 = scalar_lea.hbm %s960_s3, 512 }
 0x126   : > { %p686_p7 = scmp.ne.s32.totalorder %s409_s5, %s685_s11  ;;  %p690_p9 = scmp.lt.s32.totalorder %s409_s5, %s960_s3 }
 0x127   : > { %p691_p11 = scmp.lt.s32.totalorder %s689_s26, %s685_s11 }
 0x128   : > { %p687_p6 = pnand %p686_p7, %p870_p13 }
 0x129   : > { %p692_p12 = por %p691_p11, %p690_p9 }
 0x12a   : > { %p688_p4 = pneg %p687_p6 }
 0x12c   : > { %p693_p1 = pnand %p692_p12, %p688_p4 }
 0x12e   : > { %696 = shalt.err (!%p693_p1)
}
 0x12f   : > { %547 = dma.vmem_to_hbm [thread:$0]  (%p870_p13), %s412_s30, 256, %s409_s5, %s395_s6  }
 0x130 PF: > { %s423_s24 = sand.u32 1, %s735_s12   ;;  %p972_p8 = scmp.ne.s32.totalorder %s965_s23, 0 }
 0x131   : > { %p973_p10 = scmp.ge.s32.totalorder %s755_s17, 2  ;;  %s424_s27 = scalar_lea.sflag [#allocation4], %s423_s24 }
 0x133   : > { %p558_p0 = pnand %p973_p10, %p972_p8 }
 0x135   : > { %p559_p2 = pneg %p558_p0 }
 0x137   : > { %730 = dma.done.wait (%p559_p2), %s424_s27, 256  }
 0x138   : > { %732 = vsyncadd (%p559_p2), %s424_s27, 4294967040  ;;  %s20_s17 = sadd.s32 1, %s755_s17   ;;  %s974_s12 = smov %s739_s13 }
 0x139   : > { %p17_p3 = scmp.ge.s32.totalorder %s20_s17, 4   ;;  %s975_s13 = smov %s743_s14 }
 0x13a   : > { %s976_s14 = smov %s879_s19  ;;  %s977_s15 = smov %s751_s16 }
 0x13b   : > { %s978_s16 = smov %s980_s28  ;;  %19 = sbr.rel (!%p17_p3) target bundleno = 7 (0x7), region = 93 }
 0x140   :  { %429 = vsyncpa [#allocation3], 1 }
 0x141   :  { %431 = vsyncpa [#allocation3 + $0x1], 1 }
 0x142   :  { %432 = vsyncpa [#allocation6], 1 }
 0x143   :  { %433 = vsyncpa [#allocation4], 1 }
 0x144   :  { %435 = vsyncpa [#allocation4 + $0x1], 1 }

</bundles_post_ra>
